<compile_context>
chip_gen: v7x
topology: tpu7x:2x2x1
jax: 0.10.0
libtpu: 0.0.40
codegen_flags: <defaults>
</compile_context>

<pallas_src>
import jax
import jax.numpy as jnp
from jax.experimental import pallas as pl
from jax.experimental.pallas import tpu as pltpu

LANES = 128
# Below this many bytes, a fused XLA elementwise floor beats pallas_call
# dispatch + per-step (~0.35 us) pipeline overhead on every TPU generation.
DEFAULT_MIN_PALLAS_BYTES = 512 * 1024
# Only force a 2-way split for the second v7x TensorCore when each half is big
# enough that the 2-TC bandwidth gain beats the extra pipeline step.
MIN_SPLIT_BYTES = 2 * 1024 * 1024


def _floor_kernel(x_ref, o_ref):
    o_ref[...] = jnp.floor(x_ref[...])


def _sublane_pack(dtype) -> int:
    """Minimum sublane multiple: 8 for 32-bit, 16 for 16-bit, 32 for 8-bit dtypes."""
    itemsize = jnp.dtype(dtype).itemsize
    return max(8, 32 // max(itemsize, 1))


def _round_up(v, m):
    return ((v + m - 1) // m) * m


def _chip_traits():
    """(num_tensorcores, target_tile_bytes, vmem_limit_bytes) per TPU generation."""
    kind = ""
    try:
        kind = jax.devices()[0].device_kind.lower()
    except Exception:
        pass
    if "v7" in kind:
        # v7x: 2 TCs/chip, 64 MiB VMEM/TC, 3.2 TB/s HBM.  Bigger tiles shrink
        # per-step overhead; in+out double-buffered 8 MiB tiles = 32 MiB < 64 MiB.
        return 2, 8 * 1024 * 1024, 40 * 1024 * 1024
    # v5e / v6e: 1 TC, 128 MiB VMEM.  4 MiB tiles already keep per-step
    # overhead at a few percent of the HBM-bound step time.
    return 1, 4 * 1024 * 1024, 32 * 1024 * 1024


def _floor_2d(x2d, *, num_tc, tile_bytes, vmem_limit, donate_input):
    """Run the floor kernel over a lane-dense (rows, 128) array."""
    rows, lanes = x2d.shape
    dtype = x2d.dtype
    itemsize = jnp.dtype(dtype).itemsize
    pack = _sublane_pack(dtype)

    target_rows = max(pack, (tile_bytes // (lanes * itemsize)) // pack * pack)
    tile_rows = min(target_rows, rows)
    total_bytes = rows * lanes * itemsize

    if num_tc >= 2 and total_bytes >= MIN_SPLIT_BYTES:
        if tile_rows >= rows and rows >= 2 * pack:
            # Whole array fits in one tile: split in two so both v7x TCs stream.
            tile_rows = _round_up((rows + 1) // 2, pack)
        else:
            # Small grids: keep an even step count so the 2 TCs stay balanced.
            steps = pl.cdiv(rows, tile_rows)
            if 1 < steps < 8 and steps % 2 == 1:
                tile_rows = max(pack, _round_up(pl.cdiv(rows, steps + 1), pack))

    grid = (pl.cdiv(rows, tile_rows),)  # ragged final block is masked by Pallas

    extra = {}
    if donate_input:
        extra["input_output_aliases"] = {0: 0}

    return pl.pallas_call(
        _floor_kernel,
        out_shape=jax.ShapeDtypeStruct((rows, lanes), dtype),
        grid_spec=pltpu.PrefetchScalarGridSpec(
            num_scalar_prefetch=0,
            grid=grid,
            in_specs=[pl.BlockSpec((tile_rows, lanes), lambda i: (i, 0))],
            out_specs=pl.BlockSpec((tile_rows, lanes), lambda i: (i, 0)),
        ),
        # TODO(synk): confirm "parallel" really shards the 1-D grid across both
        # v7x TensorCores; if not, switch to pltpu.CORE_PARALLEL / pl.core_map.
        compiler_params=pltpu.CompilerParams(
            dimension_semantics=("parallel",),
            vmem_limit_bytes=vmem_limit,
        ),
        cost_estimate=pl.CostEstimate(
            flops=0, transcendentals=0,
            bytes_accessed=2 * rows * lanes * itemsize),
        **extra,
    )(x2d)


def floor_pallas(x, *, min_pallas_bytes=DEFAULT_MIN_PALLAS_BYTES,
                 donate_input=False):
    dtype = x.dtype
    if not jnp.issubdtype(dtype, jnp.floating):
        # Match torch.floor semantics: integral/bool tensors are rejected.
        raise TypeError(f"floor_pallas: floating dtype required, got {dtype}")

    n = x.size
    if n == 0:
        return x

    itemsize = jnp.dtype(dtype).itemsize
    # f64 is not natively supported by the TPU VPU; tiny inputs are faster as a
    # fused XLA op than a custom-call dispatch.
    if itemsize > 4 or n * itemsize < min_pallas_bytes:
        return jnp.floor(x)

    n_main = (n // LANES) * LANES
    if n_main == 0:
        return jnp.floor(x)

    num_tc, tile_bytes, vmem_limit = _chip_traits()
    orig_shape = x.shape

    if n_main == n:
        # Common case (128-aligned element count): contiguous reshape is free.
        x2d = jnp.reshape(x, (n // LANES, LANES))
        out2d = _floor_2d(x2d, num_tc=num_tc, tile_bytes=tile_bytes,
                          vmem_limit=vmem_limit, donate_input=donate_input)
        return out2d.reshape(orig_shape)

    # Ragged size: kernel on the 128-aligned prefix, cheap XLA floor on the
    # (<128 element) tail.  No full-array pad / slice round-trips through HBM.
    flat = jnp.ravel(x)
    main2d = jnp.reshape(flat[:n_main], (n_main // LANES, LANES))
    out_main = _floor_2d(main2d, num_tc=num_tc, tile_bytes=tile_bytes,
                         vmem_limit=vmem_limit, donate_input=False)
    tail = jnp.floor(flat[n_main:])
    return jnp.concatenate([out_main.reshape(-1), tail]).reshape(orig_shape)


if __name__ == "__main__":
    key = jax.random.PRNGKey(0)
    k0, k1, k2 = jax.random.split(key, 3)

    # Small NCHW input matching the module's typical usage.
    x_small = jax.random.uniform(k0, (2, 4, 16, 16), dtype=jnp.float32,
                                 minval=-5.0, maxval=5.0)
    y_fast = floor_pallas(x_small)                       # small-input fast path
    y_kern = floor_pallas(x_small, min_pallas_bytes=0)   # force the Pallas path
    jax.block_until_ready((y_fast, y_kern))
    ref = jnp.floor(x_small)
    assert y_fast.shape == x_small.shape and y_fast.dtype == x_small.dtype
    assert bool(jnp.all(y_fast == ref)) and bool(jnp.all(y_kern == ref))

    # Ragged (non-128-multiple) element count -> prefix-kernel + tail path.
    x_rag = jax.random.uniform(k1, (3, 5, 67), dtype=jnp.float32,
                               minval=-3.0, maxval=3.0)
    y_rag = floor_pallas(x_rag, min_pallas_bytes=0)
    jax.block_until_ready(y_rag)
    assert bool(jnp.all(y_rag == jnp.floor(x_rag)))

    # ~1 MiB input: exercises the default above-threshold Pallas path.
    x_med = jax.random.uniform(k2, (4, 8, 64, 128), dtype=jnp.float32,
                               minval=-7.0, maxval=7.0)
    y_med = floor_pallas(x_med)
    jax.block_until_ready(y_med)
    assert y_med.shape == x_med.shape and y_med.dtype == x_med.dtype
    assert bool(jnp.all(y_med == jnp.floor(x_med)))

    print("KERNEL_OK")
</pallas_src>

<mosaic_0001>
module attributes {stable_mosaic.version = 11 : i64} {
  func.func @_floor_kernel(%arg0: i32, %arg1: memref<16x128xf32, #tpu.memory_space<vmem>>, %arg2: memref<16x128xf32, #tpu.memory_space<vmem>>) attributes {dimension_semantics = [#tpu.dimension_semantics<parallel>], iteration_bounds = array<i64: 1>, scalar_prefetch = 0 : i64, scratch_operands = 0 : i64, tpu.core_type = #tpu.core_type<tc>, window_params = [{transform_indices = @transform_0, window_bounds = array<i64: 16, 128>}, {transform_indices = @transform_1, window_bounds = array<i64: 16, 128>}]} {
    %c0 = arith.constant 0 : index
    %c0_0 = arith.constant 0 : index
    %0 = vector.load %arg1[%c0, %c0_0] : memref<16x128xf32, #tpu.memory_space<vmem>>, vector<16x128xf32>
    %1 = math.floor %0 : vector<16x128xf32>
    %c0_1 = arith.constant 0 : index
    %c0_2 = arith.constant 0 : index
    %2 = vector.load %arg2[%c0_1, %c0_2] : memref<16x128xf32, #tpu.memory_space<vmem>>, vector<16x128xf32>
    tpu.vector_store %arg2[%c0_1, %c0_2], %1 {strides = array<i32>} : memref<16x128xf32, #tpu.memory_space<vmem>>, vector<16x128xf32>,
    return
  }
  func.func @transform_0(%arg0: i32) -> (i32, i32) {
    %c0_i32 = arith.constant 0 : i32
    %c0_i32_0 = arith.constant 0 : i32
    return %arg0, %c0_i32 : i32, i32
  }
  func.func @transform_1(%arg0: i32) -> (i32, i32) {
    %c0_i32 = arith.constant 0 : i32
    %c0_i32_0 = arith.constant 0 : i32
    return %arg0, %c0_i32 : i32, i32
  }
}

</mosaic_0001>

<bundles_post_ra>
// kernel: tpu_custom_call.1
= control target key start
LH: loop header
LB: loop body
LE: loop exit
PB: predicated region body
PF: predicated region fallthrough
CT: control target
= control target key end

     0   :  { %6 = vsyncpa [#allocation3], 0  ;;  %s136_s0 = inlined_call_operand.hbm [shape: f32[16,128], index: 0, kind: input, shape index: {}]   ;;  %s137_s1 = inlined_call_operand.hbm [shape: f32[16,128], index: 1, kind: output, shape index: {}]  }
   0x1   :  { %7 = vsyncpa [#allocation4], 0  ;;  %s98_s6 = smov [#allocation2]   ;;  %s50_s10 = scalar_lea.hbm %s136_s0, 256 }
   0x2   :  { %s13_s7 = sshll.u32 %s98_s6, 4  ;;  %p51_p0 = scmp.ne.s32.totalorder %s136_s0, %s50_s10  ;;  %s14_s7 = int_to_ptr.vmem [resolvable:$true] %s13_s7 }
   0x3   :  { %p54_p1 = scmp.lt.u32.totalorder %s50_s10, %s136_s0 }
   0x5   :  { %p56_p2 = pnand %p54_p1, %p51_p0 }
   0x7   :  { %59 = shalt.err (!%p56_p2)
}
   0x8   :  { %s60_s15 = scalar_lea.vmem %s14_s7, 256  ;;  %p65_p4 = scmp.lt.s32.totalorder %s14_s7, %s14_s7 }
   0x9   :  { %p61_p3 = scmp.ne.s32.totalorder %s14_s7, %s60_s15  ;;  %p66_p5 = scmp.lt.s32.totalorder %s60_s15, %s60_s15 }
   0xb   :  { %p67_p6 = por %p66_p5, %p65_p4 }
   0xd   :  { %p68_p7 = pnand %p67_p6, %p61_p3 }
   0xf   :  { %71 = shalt.err (!%p68_p7)
}
  0x10   :  { %s99_s16 = smov 128   ;;  %s100_s17 = smov 8  }
  0x11   :  { %19 = dma.hbm_to_vmem [thread:$0]  %s136_s0, 256, %s14_s7, [#allocation3], %s99_s16, %s99_s16, %s100_s17  }
  0x12   :  { %94 = dma.done.wait [#allocation3], 256  }
  0x13   :  { %95 = vsyncadd [#allocation3], 4294967040  ;;  %s101_s20 = smov [#allocation5]   ;;  %v23_v0 = vld [vmem:[#allocation2] sm:$0xff]  ;;  %v24_v1 = vld [vmem:[#allocation2 + $0x8] sm:$0xff] }
  0x14   :  { %s34_s21 = sshll.u32 %s101_s20, 4  ;;  %v25_v2 = vfloor.f32 %v23_v0  ;;  %v26_v3 = vfloor.f32 %v24_v1  ;;  %s35_s21 = int_to_ptr.vmem [resolvable:$true] %s34_s21 }
  0x15   :  { %s72_s22 = scalar_lea.vmem %s35_s21, 256  ;;  %p77_p9 = scmp.lt.s32.totalorder %s35_s21, %s35_s21 }
  0x16   :  { %27 = vst [vmem:[#allocation5] sm:$0xff] %v25_v2  ;;  %28 = vst [vmem:[#allocation5 + $0x8] sm:$0xff] %v26_v3  ;;  %p73_p8 = scmp.ne.s32.totalorder %s35_s21, %s72_s22  ;;  %p78_p10 = scmp.lt.s32.totalorder %s72_s22, %s72_s22 }
  0x18   :  { %p79_p11 = por %p78_p10, %p77_p9 }
  0x1a   :  { %p80_p12 = pnand %p79_p11, %p73_p8 }
  0x1c   :  { %83 = shalt.err (!%p80_p12)
}
  0x1d   :  { %s84_s24 = scalar_lea.hbm %s137_s1, 256 }
  0x1e   :  { %p85_p13 = scmp.ne.s32.totalorder %s137_s1, %s84_s24  ;;  %p88_p0 = scmp.lt.u32.totalorder %s84_s24, %s137_s1 }
  0x20   :  { %p90_p1 = pnand %p88_p0, %p85_p13 }
  0x22   :  { %93 = shalt.err (!%p90_p1)
}
  0x23   :  { %40 = dma.vmem_to_hbm [thread:$0]  %s35_s21, 256, %s137_s1, [#allocation4], %s99_s16, %s99_s16, %s100_s17  }
  0x24   :  { %96 = dma.done.wait [#allocation4], 256  }
  0x25   :  { %97 = vsyncadd [#allocation4], 4294967040 }
  0x26   :  { %44 = vsyncpa [#allocation3], 1 }
  0x27   :  { %45 = vsyncpa [#allocation4], 1 }

</bundles_post_ra>
